<compile_context>
chip_gen: v5e
topology: v5e:2x2
jax: 0.10.0
libtpu: 0.0.40
codegen_flags: <defaults>
</compile_context>

<pallas_src>
import numpy as np
import jax
import jax.numpy as jnp
from jax.experimental import pallas as pl
from jax.experimental.pallas import tpu as pltpu

# Bengali grapheme head sizes and the module's default weights.
N_CLASSES = (168, 11, 7)
WEIGHTS = (0.5, 0.25, 0.25)

_NCORES = 2            # v7x has 2 TensorCores; harmless (serial) extra axis on v5e/v6e
_MAX_BLOCK_ROWS = 512  # per-block batch rows (keeps vreg/VMEM pressure bounded)


def _ranges(n_classes):
    cs = [0] + list(np.cumsum(n_classes))
    return list(zip(cs[:-1], cs[1:]))


def _round_up(n, m):
    return ((n + m - 1) // m) * m


def _make_kernel(ranges, weights, batch_true):
    n_heads = len(ranges)

    def kernel(s_ref, x_ref, t_ref, out_ref):
        i = pl.program_id(0)   # core-split axis ("parallel")
        j = pl.program_id(1)   # batch-tile reduction axis ("arbitrary")

        @pl.when(j == 0)
        def _init():
            out_ref[...] = jnp.zeros_like(out_ref)

        x = x_ref[...]                                   # (TB, C) f32
        t = t_ref[...]                                   # (TB, G) i32 (absolute columns)
        tb, c = x.shape

        # Row-invariant column index + head masks, built once at (1, C).
        col = jax.lax.broadcasted_iota(jnp.int32, (1, c), 1)
        head_mask = [(col >= lo) & (col < hi) for lo, hi in ranges]

        neg = jnp.float32(-1e30)

        # Per-head maxes for numerical stability (3 masked XLU maxes).
        m = [jnp.max(jnp.where(head_mask[g], x, neg), axis=-1, keepdims=True)
             for g in range(n_heads)]

        # Single exp pass: each head's lanes get their own max subtracted;
        # lanes outside every head (incl. lane padding) exp to 0.
        xm = neg
        for g in reversed(range(n_heads)):
            xm = jnp.where(head_mask[g], x - m[g], xm)
        e = jnp.exp(xm)                                  # (TB, C)

        # All per-head exp-sums in one MXU matmul against the constant
        # segment-indicator matrix (column g marks head g's lanes).
        head_sums = jnp.dot(e, s_ref[...],
                            preferred_element_type=jnp.float32,
                            precision=jax.lax.Precision.HIGHEST)   # (TB, 128)

        # Weighted sum of per-head log-sum-exp.
        wlse = jnp.float32(0.0)
        for g in range(n_heads):
            s_g = head_sums[:, g:g + 1]                  # (TB, 1)
            wlse = wlse + jnp.float32(weights[g]) * (jnp.log(s_g) + m[g])

        # Fused weighted target-logit extraction: one mask, one mul, one reduce.
        wmask = jnp.float32(0.0)
        for g in range(n_heads):
            tgt_col = t[:, g:g + 1]                      # (TB, 1) absolute column
            wmask = jnp.where(col == tgt_col, jnp.float32(weights[g]), wmask)
        wtgt = jnp.sum(x * wmask, axis=-1, keepdims=True)   # (TB, 1)

        per_sample = wlse - wtgt                          # (TB, 1)

        # Zero out rows of the zero-padded tail tiles.
        base = (i * pl.num_programs(1) + j) * tb
        row = base + jax.lax.broadcasted_iota(jnp.int32, (tb, 1), 0)
        per_sample = jnp.where(row < batch_true, per_sample, 0.0)

        partial = jnp.sum(per_sample, axis=0, keepdims=True)   # (1, 1)
        out_ref[...] = out_ref[...] + partial             # broadcast into (8, 128) block

    return kernel


def three_labels_ce(x, targets, n_classes=N_CLASSES, weights=WEIGHTS,
                    max_block_rows=_MAX_BLOCK_ROWS):
    """x: (B, sum(n_classes)) f32 logits; targets: (B, len(n_classes)) int labels."""
    B, C = x.shape
    G = len(n_classes)
    assert C == int(np.sum(n_classes))
    assert targets.shape == (B, G)
    assert G <= 128
    ranges = _ranges(n_classes)

    # Absolute target columns (fold per-head offsets in up front).
    offsets = jnp.asarray([lo for lo, _ in ranges], jnp.int32)
    tgt_abs = targets.astype(jnp.int32) + offsets[None, :]

    # Constant (C, 128) segment-indicator matrix (lane-dense MXU operand).
    seg_np = np.zeros((C, 128), np.float32)
    for g, (lo, hi) in enumerate(ranges):
        seg_np[lo:hi, g] = 1.0
    seg = jnp.asarray(seg_np)

    # Row tiling: split batch across cores, then into blocks of <= max_block_rows.
    tb = min(max_block_rows, _round_up(max(pl.cdiv(B, _NCORES), 1), 8))
    tiles_per_core = pl.cdiv(B, _NCORES * tb)
    b_pad = _NCORES * tiles_per_core * tb
    if b_pad != B:
        x = jnp.pad(x, ((0, b_pad - B), (0, 0)))
        tgt_abs = jnp.pad(tgt_abs, ((0, b_pad - B), (0, 0)))

    def row_block_map(i, j, T=tiles_per_core):
        return (i * T + j, 0)

    kernel = _make_kernel(ranges, weights, B)

    cost = pl.CostEstimate(
        flops=int(2 * b_pad * C * 128 + 20 * b_pad * C),
        transcendentals=int(b_pad * C + G * b_pad),
        bytes_accessed=int(4 * b_pad * C + 4 * b_pad * G + 4 * C * 128 + 4 * _NCORES * 8 * 128),
    )

    out = pl.pallas_call(
        kernel,
        out_shape=jax.ShapeDtypeStruct((_NCORES * 8, 128), jnp.float32),
        grid=(_NCORES, tiles_per_core),
        in_specs=[
            pl.BlockSpec((C, 128), lambda i, j: (0, 0)),   # segment matrix (resident)
            pl.BlockSpec((tb, C), row_block_map),          # logits tile
            pl.BlockSpec((tb, G), row_block_map),          # absolute target columns
        ],
        out_specs=pl.BlockSpec((8, 128), lambda i, j: (i, 0)),   # per-core accumulator
        compiler_params=pltpu.CompilerParams(
            dimension_semantics=("parallel", "arbitrary"),
            vmem_limit_bytes=32 * 1024 * 1024,
        ),
        cost_estimate=cost,
    )(seg, x, tgt_abs)

    # Per-core partial sums live at rows 0, 8, ... (lane 0); mean over the true B.
    return jnp.sum(out[0::8, 0]) / jnp.float32(B)


def _reference(x, targets, n_classes=N_CLASSES, weights=WEIGHTS):
    """Pure-JAX reference for validation."""
    losses = []
    for g, (lo, hi) in enumerate(_ranges(n_classes)):
        logp = jax.nn.log_softmax(x[:, lo:hi], axis=-1)
        idx = targets[:, g:g + 1].astype(jnp.int32)
        nll = -jnp.take_along_axis(logp, idx, axis=-1)[:, 0]
        losses.append(jnp.mean(nll))
    return jnp.sum(jnp.stack(losses) * jnp.asarray(weights, jnp.float32))


if __name__ == "__main__":
    key = jax.random.PRNGKey(0)
    C = int(np.sum(N_CLASSES))

    # Small default-shaped check (B = 8).
    B = 8
    kx, k0, k1, k2 = jax.random.split(key, 4)
    x = jax.random.normal(kx, (B, C), dtype=jnp.float32)
    targets = jnp.stack(
        [jax.random.randint(k, (B,), 0, n, dtype=jnp.int32)
         for k, n in zip((k0, k1, k2), N_CLASSES)], axis=1)

    loss = jax.block_until_ready(three_labels_ce(x, targets))
    ref = _reference(x, targets)
    assert jnp.allclose(loss, ref, rtol=1e-4, atol=1e-4), (loss, ref)

    # Multi-tile + padded-tail check (B not a multiple of cores*block_rows).
    B2 = 40
    kx2, k3, k4, k5 = jax.random.split(jax.random.PRNGKey(1), 4)
    x2 = jax.random.normal(kx2, (B2, C), dtype=jnp.float32)
    targets2 = jnp.stack(
        [jax.random.randint(k, (B2,), 0, n, dtype=jnp.int32)
         for k, n in zip((k3, k4, k5), N_CLASSES)], axis=1)

    loss2 = jax.block_until_ready(three_labels_ce(x2, targets2, max_block_rows=8))
    ref2 = _reference(x2, targets2)
    assert jnp.allclose(loss2, ref2, rtol=1e-4, atol=1e-4), (loss2, ref2)

    print("KERNEL_OK")
</pallas_src>

<mosaic_0001>
module attributes {stable_mosaic.version = 11 : i64} {
  func.func @kernel(%arg0: i32, %arg1: i32, %arg2: memref<186x128xf32, #tpu.memory_space<vmem>>, %arg3: memref<8x186xf32, #tpu.memory_space<vmem>>, %arg4: memref<8x3xi32, #tpu.memory_space<vmem>>, %arg5: memref<8x128xf32, #tpu.memory_space<vmem>>) attributes {dimension_semantics = [#tpu.dimension_semantics<parallel>, #tpu.dimension_semantics<arbitrary>], iteration_bounds = array<i64: 2, 1>, scalar_prefetch = 0 : i64, scratch_operands = 0 : i64, tpu.core_type = #tpu.core_type<tc>, window_params = [{pipeline_mode = #tpu.pipeline_mode<synchronous>, transform_indices = @transform_0, window_bounds = array<i64: 186, 128>}, {transform_indices = @transform_1, window_bounds = array<i64: 8, 186>}, {transform_indices = @transform_2, window_bounds = array<i64: 8, 3>}, {transform_indices = @transform_3, window_bounds = array<i64: 8, 128>}]} {
    %c0_i32 = arith.constant 0 : i32
    %0 = arith.cmpi eq, %arg1, %c0_i32 : i32
    %1 = arith.extui %0 : i1 to i32
    %c0_i32_0 = arith.constant 0 : i32
    %2 = arith.cmpi ne, %1, %c0_i32_0 : i32
    scf.if %2 {
      %cst_32 = arith.constant 0.000000e+00 : f32
      %116 = vector.broadcast %cst_32 : f32 to vector<8x128xf32>
      %c0_33 = arith.constant 0 : index
      %c0_34 = arith.constant 0 : index
      %117 = vector.load %arg5[%c0_33, %c0_34] : memref<8x128xf32, #tpu.memory_space<vmem>>, vector<8x128xf32>
      tpu.vector_store %arg5[%c0_33, %c0_34], %116 {strides = array<i32>} : memref<8x128xf32, #tpu.memory_space<vmem>>, vector<8x128xf32>,
    } else {
    }
    %c0 = arith.constant 0 : index
    %c0_1 = arith.constant 0 : index
    %3 = vector.load %arg3[%c0, %c0_1] : memref<8x186xf32, #tpu.memory_space<vmem>>, vector<8x186xf32>
    %c0_2 = arith.constant 0 : index
    %c0_3 = arith.constant 0 : index
    %4 = vector.load %arg4[%c0_2, %c0_3] : memref<8x3xi32, #tpu.memory_space<vmem>>, vector<8x3xi32>
    %5 = tpu.iota {dimensions = array<i32: 1>} : vector<1x186xi32>
    %c0_i32_4 = arith.constant 0 : i32
    %6 = vector.broadcast %c0_i32_4 : i32 to vector<1x186xi32>
    %7 = arith.cmpi sge, %5, %6 : vector<1x186xi32>
    %c168_i32 = arith.constant 168 : i32
    %8 = vector.broadcast %c168_i32 : i32 to vector<1x186xi32>
    %9 = arith.cmpi slt, %5, %8 : vector<1x186xi32>
    %10 = arith.andi %7, %9 : vector<1x186xi1>
    %c168_i32_5 = arith.constant 168 : i32
    %11 = vector.broadcast %c168_i32_5 : i32 to vector<1x186xi32>
    %12 = arith.cmpi sge, %5, %11 : vector<1x186xi32>
    %c179_i32 = arith.constant 179 : i32
    %13 = vector.broadcast %c179_i32 : i32 to vector<1x186xi32>
    %14 = arith.cmpi slt, %5, %13 : vector<1x186xi32>
    %15 = arith.andi %12, %14 : vector<1x186xi1>
    %c179_i32_6 = arith.constant 179 : i32
    %16 = vector.broadcast %c179_i32_6 : i32 to vector<1x186xi32>
    %17 = arith.cmpi sge, %5, %16 : vector<1x186xi32>
    %c186_i32 = arith.constant 186 : i32
    %18 = vector.broadcast %c186_i32 : i32 to vector<1x186xi32>
    %19 = arith.cmpi slt, %5, %18 : vector<1x186xi32>
    %20 = arith.andi %17, %19 : vector<1x186xi1>
    %cst = arith.constant -1.000000e+30 : f32
    %21 = vector.shape_cast %10 : vector<1x186xi1> to vector<1x186xi1>
    %22 = vector.broadcast %21 : vector<1x186xi1> to vector<8x186xi1>
    %23 = vector.broadcast %cst : f32 to vector<8x186xf32>
    %24 = arith.select %22, %3, %23 : vector<8x186xi1>, vector<8x186xf32>
    %cst_7 = arith.constant dense<0xFF800000> : vector<8xf32>
    %25 = vector.multi_reduction <maximumf>, %24, %cst_7 [1] : vector<8x186xf32> to vector<8xf32>
    %26 = vector.shape_cast %25 : vector<8xf32> to vector<8x1xf32>
    %cst_8 = arith.constant -1.000000e+30 : f32
    %27 = vector.shape_cast %15 : vector<1x186xi1> to vector<1x186xi1>
    %28 = vector.broadcast %27 : vector<1x186xi1> to vector<8x186xi1>
    %29 = vector.broadcast %cst_8 : f32 to vector<8x186xf32>
    %30 = arith.select %28, %3, %29 : vector<8x186xi1>, vector<8x186xf32>
    %cst_9 = arith.constant dense<0xFF800000> : vector<8xf32>
    %31 = vector.multi_reduction <maximumf>, %30, %cst_9 [1] : vector<8x186xf32> to vector<8xf32>
    %32 = vector.shape_cast %31 : vector<8xf32> to vector<8x1xf32>
    %cst_10 = arith.constant -1.000000e+30 : f32
    %33 = vector.shape_cast %20 : vector<1x186xi1> to vector<1x186xi1>
    %34 = vector.broadcast %33 : vector<1x186xi1> to vector<8x186xi1>
    %35 = vector.broadcast %cst_10 : f32 to vector<8x186xf32>
    %36 = arith.select %34, %3, %35 : vector<8x186xi1>, vector<8x186xf32>
    %cst_11 = arith.constant dense<0xFF800000> : vector<8xf32>
    %37 = vector.multi_reduction <maximumf>, %36, %cst_11 [1] : vector<8x186xf32> to vector<8xf32>
    %38 = vector.shape_cast %37 : vector<8xf32> to vector<8x1xf32>
    %39 = vector.broadcast %38 : vector<8x1xf32> to vector<8x186xf32>
    %40 = arith.subf %3, %39 : vector<8x186xf32>
    %cst_12 = arith.constant -1.000000e+30 : f32
    %41 = vector.shape_cast %20 : vector<1x186xi1> to vector<1x186xi1>
    %42 = vector.broadcast %41 : vector<1x186xi1> to vector<8x186xi1>
    %43 = vector.broadcast %cst_12 : f32 to vector<8x186xf32>
    %44 = arith.select %42, %40, %43 : vector<8x186xi1>, vector<8x186xf32>
    %45 = vector.broadcast %32 : vector<8x1xf32> to vector<8x186xf32>
    %46 = arith.subf %3, %45 : vector<8x186xf32>
    %47 = vector.shape_cast %15 : vector<1x186xi1> to vector<1x186xi1>
    %48 = vector.broadcast %47 : vector<1x186xi1> to vector<8x186xi1>
    %49 = arith.select %48, %46, %44 : vector<8x186xi1>, vector<8x186xf32>
    %50 = vector.broadcast %26 : vector<8x1xf32> to vector<8x186xf32>
    %51 = arith.subf %3, %50 : vector<8x186xf32>
    %52 = vector.shape_cast %10 : vector<1x186xi1> to vector<1x186xi1>
    %53 = vector.broadcast %52 : vector<1x186xi1> to vector<8x186xi1>
    %54 = arith.select %53, %51, %49 : vector<8x186xi1>, vector<8x186xf32>
    %55 = math.exp %54 : vector<8x186xf32>
    %c0_13 = arith.constant 0 : index
    %c0_14 = arith.constant 0 : index
    %56 = vector.load %arg2[%c0_13, %c0_14] : memref<186x128xf32, #tpu.memory_space<vmem>>, vector<186x128xf32>
    %cst_15 = arith.constant dense<0.000000e+00> : vector<8x128xf32>
    %57 = tpu.matmul %55, %56, %cst_15 {dimension_numbers = #tpu.dot_dimension_numbers<[1], [0], [0], [1], [0, 0, 1, 1], [], []>, precision = #tpu.contract_precision<fp32>} : vector<8x186xf32>, vector<186x128xf32>, vector<8x128xf32> -> vector<8x128xf32>
    %58 = vector.extract_strided_slice %57 {offsets = [0, 0], sizes = [8, 1], strides = [1, 1]} : vector<8x128xf32> to vector<8x1xf32>
    %59 = math.log %58 : vector<8x1xf32>
    %60 = arith.addf %59, %26 : vector<8x1xf32>
    %cst_16 = arith.constant 5.000000e-01 : f32
    %61 = vector.broadcast %cst_16 : f32 to vector<8x1xf32>
    %62 = arith.mulf %61, %60 : vector<8x1xf32>
    %cst_17 = arith.constant 0.000000e+00 : f32
    %63 = vector.broadcast %cst_17 : f32 to vector<8x1xf32>
    %64 = arith.addf %63, %62 : vector<8x1xf32>
    %65 = vector.extract_strided_slice %57 {offsets = [0, 1], sizes = [8, 1], strides = [1, 1]} : vector<8x128xf32> to vector<8x1xf32>
    %66 = math.log %65 : vector<8x1xf32>
    %67 = arith.addf %66, %32 : vector<8x1xf32>
    %cst_18 = arith.constant 2.500000e-01 : f32
    %68 = vector.broadcast %cst_18 : f32 to vector<8x1xf32>
    %69 = arith.mulf %68, %67 : vector<8x1xf32>
    %70 = arith.addf %64, %69 : vector<8x1xf32>
    %71 = vector.extract_strided_slice %57 {offsets = [0, 2], sizes = [8, 1], strides = [1, 1]} : vector<8x128xf32> to vector<8x1xf32>
    %72 = math.log %71 : vector<8x1xf32>
    %73 = arith.addf %72, %38 : vector<8x1xf32>
    %cst_19 = arith.constant 2.500000e-01 : f32
    %74 = vector.broadcast %cst_19 : f32 to vector<8x1xf32>
    %75 = arith.mulf %74, %73 : vector<8x1xf32>
    %76 = arith.addf %70, %75 : vector<8x1xf32>
    %77 = vector.extract_strided_slice %4 {offsets = [0, 0], sizes = [8, 1], strides = [1, 1]} : vector<8x3xi32> to vector<8x1xi32>
    %78 = vector.broadcast %5 : vector<1x186xi32> to vector<8x186xi32>
    %79 = vector.broadcast %77 : vector<8x1xi32> to vector<8x186xi32>
    %80 = arith.cmpi eq, %78, %79 : vector<8x186xi32>
    %cst_20 = arith.constant 5.000000e-01 : f32
    %cst_21 = arith.constant 0.000000e+00 : f32
    %81 = vector.broadcast %cst_20 : f32 to vector<8x186xf32>
    %82 = vector.broadcast %cst_21 : f32 to vector<8x186xf32>
    %83 = arith.select %80, %81, %82 : vector<8x186xi1>, vector<8x186xf32>
    %84 = vector.extract_strided_slice %4 {offsets = [0, 1], sizes = [8, 1], strides = [1, 1]} : vector<8x3xi32> to vector<8x1xi32>
    %85 = vector.broadcast %5 : vector<1x186xi32> to vector<8x186xi32>
    %86 = vector.broadcast %84 : vector<8x1xi32> to vector<8x186xi32>
    %87 = arith.cmpi eq, %85, %86 : vector<8x186xi32>
    %cst_22 = arith.constant 2.500000e-01 : f32
    %88 = vector.broadcast %cst_22 : f32 to vector<8x186xf32>
    %89 = arith.select %87, %88, %83 : vector<8x186xi1>, vector<8x186xf32>
    %90 = vector.extract_strided_slice %4 {offsets = [0, 2], sizes = [8, 1], strides = [1, 1]} : vector<8x3xi32> to vector<8x1xi32>
    %91 = vector.broadcast %5 : vector<1x186xi32> to vector<8x186xi32>
    %92 = vector.broadcast %90 : vector<8x1xi32> to vector<8x186xi32>
    %93 = arith.cmpi eq, %91, %92 : vector<8x186xi32>
    %cst_23 = arith.constant 2.500000e-01 : f32
    %94 = vector.broadcast %cst_23 : f32 to vector<8x186xf32>
    %95 = arith.select %93, %94, %89 : vector<8x186xi1>, vector<8x186xf32>
    %96 = arith.mulf %3, %95 : vector<8x186xf32>
    %cst_24 = arith.constant dense<0.000000e+00> : vector<8xf32>
    %97 = vector.multi_reduction <add>, %96, %cst_24 [1] : vector<8x186xf32> to vector<8xf32>
    %98 = vector.shape_cast %97 : vector<8xf32> to vector<8x1xf32>
    %99 = arith.subf %76, %98 : vector<8x1xf32>
    %c1_i32 = arith.constant 1 : i32
    %100 = arith.muli %arg0, %c1_i32 : i32
    %101 = arith.addi %100, %arg1 : i32
    %c8_i32 = arith.constant 8 : i32
    %102 = arith.muli %101, %c8_i32 : i32
    %103 = tpu.iota {dimensions = array<i32: 0>} : vector<8x1xi32>
    %104 = vector.broadcast %102 : i32 to vector<8x1xi32>
    %105 = arith.addi %104, %103 : vector<8x1xi32>
    %c8_i32_25 = arith.constant 8 : i32
    %106 = vector.broadcast %c8_i32_25 : i32 to vector<8x1xi32>
    %107 = arith.cmpi slt, %105, %106 : vector<8x1xi32>
    %cst_26 = arith.constant 0.000000e+00 : f32
    %108 = vector.broadcast %cst_26 : f32 to vector<8x1xf32>
    %109 = arith.select %107, %99, %108 : vector<8x1xi1>, vector<8x1xf32>
    %cst_27 = arith.constant dense<0.000000e+00> : vector<1xf32>
    %110 = vector.multi_reduction <add>, %109, %cst_27 [0] : vector<8x1xf32> to vector<1xf32>
    %111 = vector.shape_cast %110 : vector<1xf32> to vector<1x1xf32>
    %c0_28 = arith.constant 0 : index
    %c0_29 = arith.constant 0 : index
    %112 = vector.load %arg5[%c0_28, %c0_29] : memref<8x128xf32, #tpu.memory_space<vmem>>, vector<8x128xf32>
    %113 = vector.broadcast %111 : vector<1x1xf32> to vector<8x128xf32>
    %114 = arith.addf %112, %113 : vector<8x128xf32>
    %c0_30 = arith.constant 0 : index
    %c0_31 = arith.constant 0 : index
    %115 = vector.load %arg5[%c0_30, %c0_31] : memref<8x128xf32, #tpu.memory_space<vmem>>, vector<8x128xf32>
    tpu.vector_store %arg5[%c0_30, %c0_31], %114 {strides = array<i32>} : memref<8x128xf32, #tpu.memory_space<vmem>>, vector<8x128xf32>,
    return
  }
  func.func @transform_0(%arg0: i32, %arg1: i32) -> (i32, i32) {
    %c0_i32 = arith.constant 0 : i32
    %c0_i32_0 = arith.constant 0 : i32
    %c0_i32_1 = arith.constant 0 : i32
    return %c0_i32, %c0_i32_0 : i32, i32
  }
  func.func @transform_1(%arg0: i32, %arg1: i32) -> (i32, i32) {
    %c1_i32 = arith.constant 1 : i32
    %0 = arith.muli %arg0, %c1_i32 : i32
    %1 = arith.addi %0, %arg1 : i32
    %c0_i32 = arith.constant 0 : i32
    %c0_i32_0 = arith.constant 0 : i32
    return %1, %c0_i32 : i32, i32
  }
  func.func @transform_2(%arg0: i32, %arg1: i32) -> (i32, i32) {
    %c1_i32 = arith.constant 1 : i32
    %0 = arith.muli %arg0, %c1_i32 : i32
    %1 = arith.addi %0, %arg1 : i32
    %c0_i32 = arith.constant 0 : i32
    %c0_i32_0 = arith.constant 0 : i32
    return %1, %c0_i32 : i32, i32
  }
  func.func @transform_3(%arg0: i32, %arg1: i32) -> (i32, i32) {
    %c0_i32 = arith.constant 0 : i32
    %c0_i32_0 = arith.constant 0 : i32
    return %arg0, %c0_i32 : i32, i32
  }
}

</mosaic_0001>

<bundles_post_ra>
// kernel: tpu_custom_call.1
= control target key start
LH: loop header
LB: loop body
LE: loop exit
PB: predicated region body
PF: predicated region fallthrough
CT: control target
= control target key end

     0   :  { %8 = vsyncpa [#allocation3], 0  ;;  %s1980_s0 = inlined_call_operand.hbm [shape: f32[186,128], index: 0, kind: input, shape index: {}]   ;;  %s1981_s1 = inlined_call_operand.hbm [shape: f32[16,186], index: 1, kind: input, shape index: {}]   ;;  %s1982_s2 = inlined_call_operand.vmem [shape: s32[16,3], index: 2, kind: input, shape index: {}]   ;;  %s1983_s3 = inlined_call_operand.hbm [shape: f32[16,128], index: 3, kind: output, shape index: {}]  }
   0x1   :  { %9 = vsyncpa [#allocation6], 0 }
   0x2   :  { %11 = vsyncpa [#allocation6 + $0x1], 0 }
   0x3   :  { %12 = vsyncpa [#allocation4], 0 }
   0x4   :  { %14 = vsyncpa [#allocation4 + $0x1], 0  ;;  %s1408_s12 = smov 0   ;;  %s1410_s13 = smov 0  }
   0x5   :  { %s1412_s14 = smov 0   ;;  %s1414_s15 = smov 0  }
   0x6   :  { %s1416_s16 = smov 0   ;;  %s1418_s17 = smov 0  }
   0x7 LB: > { %s1121_s18 = sadd.s32 4294967295, %s1377_s17   ;;  %p1123_p0 = scmp.ge.s32.totalorder %s1377_s17, 1  ;;  %s1377_s17 = sphi %s1418_s17, %s20_s17   ;;  %s1373_s16 = sphi %s1416_s16, %s1998_s16   ;;  %s1369_s15 = sphi %s1414_s15, %s1997_s15   ;;  %s1365_s14 = sphi %s1412_s14, %s1996_s14   ;;  %s1361_s13 = sphi %s1410_s13, %s1995_s13   ;;  %s1357_s12 = sphi %s1408_s12, %s1994_s12  }
   0x8   : > { %p1440_p1 = scmp.eq.s32.totalorder %s1121_s18, 0  ;;  %p140_p2 = scmp.lt.s32.totalorder %s1377_s17, 3 }
   0x9   : > { %s151_s22 = sshll.u32 %s1980_s0, 4  ;;  %s1379_s24 = smov [#allocation2]   ;;  %s152_s22 = int_to_ptr.hbm [resolvable:$true] %s151_s22 }
   0xa   : > { %p1448_p3 = pnand %p1123_p0, %p140_p2  ;;  %s153_s25 = sshll.u32 %s1379_s24, 4  ;;  %s154_s25 = int_to_ptr.vmem [resolvable:$true] %s153_s25 }
   0xb   : > { %p1125_p6 = scmp.ge.s32.totalorder %s1377_s17, 2  ;;  %s1380_s26 = smov 128  }
   0xc   : > { %p1148_p4 = pneg %p1448_p3  ;;  %s1381_s27 = smov 8  }
   0xd   : > { %s1122_s28 = sadd.s32 4294967294, %s1377_s17   ;;  %s32_s29 = sadd.s32 1, %s1373_s16 }
   0xe   : > { %p1149_p5 = pnand %p1148_p4, %p1440_p1  ;;  %s62_s30 = sadd.s32 1, %s1365_s14 }
   0xf   : > { %p34_p7 = scmp.ge.s32.totalorder %s32_s29, 2  ;;  %p69_p8 = scmp.ne.s32.totalorder %s1365_s14, %s1361_s13 }
  0x10   : > { %1151 = dma.hbm_to_vmem [thread:$0]  (!%p1149_p5), %s152_s22, 3072, %s154_s25, [#allocation3], %s1380_s26, %s1380_s26, %s1381_s27  }
  0x11   : > { %p70_p9 = scmp.eq.s32.totalorder %s1377_s17, 0  ;;  %p75_p10 = scmp.ne.s32.totalorder %s1361_s13, %s1357_s12 }
  0x12   : > { %s2000_s29 = smov (%p34_p7, %s32_s29), 0  ;;  %p127_p13 = scmp.eq.s32.totalorder %s1121_s18, 1 }
  0x13   : > { %p1467_p11 = por %p70_p9, %p69_p8  ;;  %p1473_p12 = por %p1440_p1, %p75_p10 }
  0x14   : > { %s59_s6 = ssub.s32 %s1373_s16, %s2000_s29  ;;  %p133_p2 = scmp.eq.s32.totalorder %s1122_s28, 1 }
  0x15   : > { %p60_p0 = scmp.eq.s32.totalorder %s59_s6, 0  ;;  %p1479_p4 = por %p127_p13, %p69_p8 }
  0x16   : > { %p1161_p5 = scmp.lt.s32.totalorder %s1377_s17, 2  ;;  %p1487_p7 = por %p133_p2, %p75_p10 }
  0x17   : > { %s1485_s8 = scalar_select %p60_p0, %s1365_s14, %s62_s30  }
  0x18   : > { %s167_s10 = sand.u32 1, %s1365_s14   ;;  %s1139_s20 = sshll.u32 %s1373_s16, 4 }
  0x19   : > { %s1126_s11 = sshll.u32 %s167_s10, 4  ;;  %s177_s18 = scalar_lea.hbm %s1981_s1, %s1139_s20 }
  0x1a   : > { %s171_s24 = scalar_lea.vmem [#allocation5], %s1126_s11  ;;  %s179_s26 = sshll.u32 %s177_s18, 4  ;;  %s180_s26 = int_to_ptr.hbm [resolvable:$true] %s179_s26 }
  0x1b   : > { %s181_s25 = sshll.u32 %s171_s24, 4  ;;  %p1153_p8 = pnand %p1161_p5, %p1467_p11  ;;  %s182_s25 = int_to_ptr.vmem [resolvable:$true] %s181_s25 }
  0x1c   : > { %s168_s27 = scalar_lea.sflag [#allocation6], %s167_s10  ;;  %199 = sbr.rel (%p1448_p3) target bundleno = 650 (0x28a), region = 32 }
  0x1d   : > { %1155 = dma.hbm_to_vmem [thread:$0]  (!%p1153_p8), %s180_s26, 256, %s182_s25, %s168_s27  }
  0x21   : > { %1344 = dma.done.wait (%p1440_p1), [#allocation3], 3072  }
  0x22   : > { %1346 = vsyncadd (%p1440_p1), [#allocation3], 4294964224  ;;  %s1505_s28 = sand.u32 1, %s1361_s13  }
  0x23   : > { %s1131_s30 = sshll.u32 %s1505_s28, 4  ;;  %s207_s4 = scalar_lea.sflag [#allocation6], %s1505_s28 }
  0x24   : > { %s210_s6 = scalar_lea.vmem [#allocation5], %s1131_s30 }
  0x25   : > { %1348 = dma.done.wait (%p1473_p12), %s207_s4, 256  }
  0x26   : > { %1350 = vsyncadd (%p1473_p12), %s207_s4, 4294967040  ;;  %v254_v0 = vlaneseq  ;;  %vm281_vm0 = vcmask 474112   ;;  %v1523_v3 = vld [vmem:[%s210_s6 + $0x8] sm:$0xff]  ;;  %v1529_v5 = vld [vmem:[%s210_s6] sm:$0xff]  ;;  %vm349_vm8 = vcmask 1041408   ;;  %p241_p1 = scmp.lt.s32.totalorder %s1369_s15, 1 }
  0x27   : > { %v337_v9 = vld [vmem:[#allocation2 + $0x78] sm:$0xff]  ;;  %v336_v10 = vld [vmem:[#allocation2 + $0x70] sm:$0xff]  ;;  %v335_v15 = vld [vmem:[#allocation2 + $0x68] sm:$0xff]  ;;  %s1385_s20 = smov 126   ;;  %s1386_s21 = smov 127  }
  0x28   : > { %v1514_v1 = vand.u32 127, %v254_v0  ;;  %v1547_v14 = vand.u32 4294901760, %v337_v9  ;;  %v1550_v18 = vand.u32 4294901760, %v336_v10  ;;  %v334_v19 = vld [vmem:[#allocation2 + $0x60] sm:$0xff]  ;;  %v333_v20 = vld [vmem:[#allocation2 + $0x58] sm:$0xff]  ;;  %v1556_v23 = vand.u32 4294901760, %v335_v15 }
  0x29   : > { %v1558_v24 = vand.u32 4294901760, %v334_v19  ;;  %v332_v25 = vld [vmem:[#allocation2 + $0x50] sm:$0xff]  ;;  %v331_v26 = vld [vmem:[#allocation2 + $0x48] sm:$0xff]  ;;  %v1565_v28 = vand.u32 4294901760, %v333_v20  ;;  %v330_v31 = vld [vmem:[#allocation2 + $0x40] sm:$0xff]  ;;  %s242_s19 = scalar_select %p241_p1, %s1369_s15, 1 }
  0x2a   : > { %v1517_v2 = vadd.s32 128, %v1514_v1  ;;  %v1554_v22 = vsub.f32 %v337_v9, %v1547_v14  ;;  %354 = vmatpush.msra.mxu0 %v1547_v14  ;;  %550 = vmatpush.msra.mxu3 %v1547_v14  ;;  %v1563_v27 = vsub.f32 %v336_v10, %v1550_v18  ;;  %v1567_v29 = vand.u32 4294901760, %v332_v25  ;;  %v329_v48 = vld [vmem:[#allocation2 + $0x38] sm:$0xff]  ;;  %v328_v52 = vld [vmem:[#allocation2 + $0x30] sm:$0xff]  ;;  %v327_v55 = vld [vmem:[#allocation2 + $0x28] sm:$0xff]  ;;  %s1134_s22 = sshll.u32 %s1369_s15, 3 }
  0x2b   : > { %v1569_v30 = vand.u32 4294901760, %v331_v26  ;;  %v1573_v33 = vsub.f32 %v335_v15, %v1556_v23  ;;  %v1576_v34 = vsub.f32 %v334_v19, %v1558_v24  ;;  %v1579_v35 = vand.u32 4294901760, %v330_v31  ;;  %v326_v56 = vld [vmem:[#allocation2 + $0x20] sm:$0xff]  ;;  %v325_v63 = vld [vmem:[#allocation2 + $0x18] sm:$0xff]  ;;  %s1133_s23 = sshll.u32 %s242_s19, 3  ;;  %s1132_s15 = sshll.u32 %s1505_s28, 3 }
  0x2c   : > { %vm270_vm1 = vcmp.ge.s32.totalorder %v1517_v2, 179  ;;  %vm272_vm2 = vcmp.lt.s32.totalorder %v1517_v2, 186  ;;  %vm260_vm3 = vcmp.lt.s32.totalorder %v1517_v2, 168  ;;  %vm264_vm4 = vcmp.ge.s32.totalorder %v1517_v2, 168  ;;  %356 = vmatpush.msra.mxu0 %v1550_v18  ;;  %552 = vmatpush.msra.mxu3 %v1550_v18  ;;  %s244_s11 = scalar_lea.vmem %s1982_s2, %s1133_s23  ;;  %s1013_s25 = scalar_lea.hbm %s1983_s3, %s1134_s22 }
  0x2d   : > { %vm1525_vm5 = vmand %vm270_vm1, %vm272_vm2  ;;  %vm266_vm6 = vcmp.lt.s32.totalorder %v1517_v2, 179  ;;  %v280_v7 = vsel %vm260_vm3, %v1523_v3, -1e+30  ;;  %v396_v32 = vand.u32 4294901760, %v1554_v22  ;;  %v402_v36 = vand.u32 4294901760, %v1563_v27  ;;  %497 = vmatpush.msra.mxu2 %v1554_v22  ;;  %s238_s26 = scalar_lea.vmem [#allocation7], %s1132_s15 }
  0x2e   : > { %v301_v6 = vsel %vm1525_vm5, %v1523_v3, -1e+30  ;;  %vm1538_vm7 = vmand %vm264_vm4, %vm266_vm6  ;;  %v282_v12 = vsel %vm281_vm0, %v280_v7, -inf  ;;  %v1584_v37 = vsub.f32 %v333_v20, %v1565_v28  ;;  %v1587_v38 = vsub.f32 %v332_v25, %v1567_v29  ;;  %358 = vmatpush.msra.mxu0 %v1556_v23  ;;  %554 = vmatpush.msra.mxu3 %v1556_v23  ;;  %s1015_s27 = sshll.u32 %s238_s26, 4  ;;  %s1017_s30 = sshll.u32 %s1013_s25, 4  ;;  %s1016_s27 = int_to_ptr.vmem [resolvable:$true] %s1015_s27  ;;  %s1018_s30 = int_to_ptr.hbm [resolvable:$true] %s1017_s30 }
  0x2f   : > { %v302_v11 = vsel %vm281_vm0, %v301_v6, -inf  ;;  %v291_v13 = vsel %vm1538_vm7, %v1523_v3, -1e+30  ;;  %v283_v17 = vmax.f32 %v1529_v5, %v282_v12  ;;  %v1590_v39 = vsub.f32 %v331_v26, %v1569_v30  ;;  %500 = vmatpush.msra.mxu2 %v1563_v27  ;;  %s1003_s4 = scalar_lea.sflag [#allocation4], %s1505_s28  ;;  %s1305_s6 = sshra.s32 %s1018_s30, 4  ;;  %s1306_s6 = int_to_ptr.hbm [resolvable:$true] %s1305_s6 }
  0x30   : > { %v303_v16 = vmax.f32 %v302_v11, -1e+30  ;;  %v292_v21 = vsel %vm281_vm0, %v291_v13, -inf  ;;  %v397_v41 = vsub.f32 %v1554_v22, %v396_v32  ;;  %v408_v42 = vand.u32 4294901760, %v1573_v33  ;;  %360 = vmatpush.msra.mxu0 %v1558_v24  ;;  %556 = vmatpush.msra.mxu3 %v1558_v24  ;;  %v324_v13 = vld [vmem:[#allocation2 + $0x10] sm:$0xff]  ;;  %s1307_s19 = scalar_lea.hbm %s1306_s6, 8  ;;  %p1312_p11 = scmp.lt.s32.totalorder %s1306_s6, %s1983_s3 }
  0x31   : > { %284 = vmax.xlane.f32.xlu1 %v283_v17  ;;  %v293_v40 = vmax.f32 %v292_v21, -1e+30  ;;  %v414_v43 = vand.u32 4294901760, %v1576_v34  ;;  %v403_v44 = vsub.f32 %v1563_v27, %v402_v36  ;;  %v420_v45 = vand.u32 4294901760, %v1584_v37  ;;  %503 = vmatpush.msra.mxu2 %v1573_v33  ;;  %v323_v21 = vld [vmem:[#allocation2 + $0x8] sm:$0xff]  ;;  %p1308_p3 = scmp.ne.s32.totalorder %s1306_s6, %s1307_s19  ;;  %s1311_s10 = scalar_lea.hbm %s1983_s3, 16 }
  0x32   : > { %304 = vmax.xlane.f32.xlu0 %v303_v16  ;;  %v426_v46 = vand.u32 4294901760, %v1587_v38  ;;  %v1606_v47 = vsub.f32 %v330_v31, %v1579_v35  ;;  %v398_v49 = vand.u32 4294901760, %v397_v41  ;;  %v409_v50 = vsub.f32 %v1573_v33, %v408_v42  ;;  %362 = vmatpush.msra.mxu0 %v1565_v28  ;;  %v342_v33 = vld [vmem:[#allocation2 + $0xa0] sm:$0xff]  ;;  %p1313_p12 = scmp.lt.s32.totalorder %s1311_s10, %s1307_s19 }
  0x33   : > { %v415_v51 = vsub.f32 %v1576_v34, %v414_v43  ;;  %v404_v53 = vand.u32 4294901760, %v403_v44  ;;  %v432_v54 = vand.u32 4294901760, %v1590_v39  ;;  %v421_v58 = vsub.f32 %v1584_v37, %v420_v45  ;;  %558 = vmatpush.msra.mxu3 %v1565_v28  ;;  %506 = vmatpush.msra.mxu2 %v1576_v34  ;;  %v322_v44 = vld [vmem:[#allocation2] sm:$0xff]  ;;  %p1309_p9 = pnand %p1308_p3, %p1479_p4 }
  0x34   : > { %399 = vmatpush.msra.mxu1 %v398_v49  ;;  %v410_v57 = vand.u32 4294901760, %v409_v50  ;;  %v1623_v59 = vand.u32 4294901760, %v329_v48  ;;  %v427_v60 = vsub.f32 %v1587_v38, %v426_v46  ;;  %v438_v61 = vand.u32 4294901760, %v1606_v47  ;;  %364 = vmatpush.msra.mxu0 %v1567_v29  ;;  %p1314_p13 = por %p1313_p12, %p1312_p11 }
  0x35   : > { %v1629_v62 = vand.u32 4294901760, %v328_v52  ;;  %v416_v6 = vand.u32 4294901760, %v415_v51  ;;  %v1636_v9 = vand.u32 4294901760, %v327_v55  ;;  %v1638_v10 = vand.u32 4294901760, %v326_v56  ;;  %560 = vmatpush.msra.mxu3 %v1567_v29  ;;  %509 = vmatpush.msra.mxu2 %v1584_v37  ;;  %p1310_p10 = pneg %p1309_p9 }
  0x36   : > { %405 = vmatpush.msra.mxu1 %v404_v53  ;;  %v1633_v7 = vsub.f32 %v329_v48, %v1623_v59  ;;  %v433_v11 = vsub.f32 %v1590_v39, %v432_v54  ;;  %v422_v15 = vand.u32 4294901760, %v421_v58  ;;  %366 = vmatpush.msra.mxu0 %v1569_v30  ;;  %v1653_v19 = vand.u32 4294901760, %v325_v63 }
  0x37   : > { %v1644_v12 = vsub.f32 %v328_v52, %v1629_v62  ;;  %v1651_v17 = vsub.f32 %v327_v55, %v1636_v9  ;;  %v439_v20 = vsub.f32 %v1606_v47, %v438_v61  ;;  %562 = vmatpush.msra.mxu3 %v1569_v30  ;;  %v428_v25 = vand.u32 4294901760, %v427_v60  ;;  %512 = vmatpush.msra.mxu2 %v1587_v38  ;;  %v341_v38 = vld [vmem:[#allocation2 + $0x98] sm:$0xff]  ;;  %p1315_p0 = pnand %p1314_p13, %p1310_p10 }
  0x38   : > { %411 = vmatpush.msra.mxu1 %v410_v57  ;;  %v444_v16 = vand.u32 4294901760, %v1633_v7  ;;  %368 = vmatpush.msra.mxu0 %v1579_v35  ;;  %v1663_v31 = vsub.f32 %v326_v56, %v1638_v10  ;;  %v434_v41 = vand.u32 4294901760, %v433_v11  ;;  %v1675_v50 = vsub.f32 %v325_v63, %v1653_v19 }
  0x39   : > { %v450_v26 = vand.u32 4294901760, %v1644_v12  ;;  %564 = vmatpush.msra.mxu3 %v1579_v35  ;;  %v456_v49 = vand.u32 4294901760, %v1651_v17  ;;  %v1677_v51 = vand.u32 4294901760, %v323_v21  ;;  %v440_v52 = vand.u32 4294901760, %v439_v20  ;;  %515 = vmatpush.msra.mxu2 %v1590_v39 }
  0x3a   : > { %294 = vmax.xlane.f32.xlu0 %v293_v40  ;;  %417 = vmatpush.msra.mxu1 %v416_v6  ;;  %v1665_v40 = vand.u32 4294901760, %v324_v13  ;;  %v445_v48 = vsub.f32 %v1633_v7, %v444_v16  ;;  %v462_v55 = vand.u32 4294901760, %v1663_v31  ;;  %v1689_v57 = vand.u32 4294901760, %v322_v44 }
  0x3b   : > { %370 = vmatpush.msra.mxu0 %v1623_v59  ;;  %566 = vmatpush.msra.mxu3 %v1623_v59  ;;  %v451_v53 = vsub.f32 %v1644_v12, %v450_v26  ;;  %v457_v60 = vsub.f32 %v1651_v17, %v456_v49  ;;  %v468_v63 = vand.u32 4294901760, %v1675_v50  ;;  %v1699_v6 = vsub.f32 %v323_v21, %v1677_v51 }
  0x3c   : > { %423 = vmatpush.msra.mxu1 %v422_v15  ;;  %v1687_v56 = vsub.f32 %v324_v13, %v1665_v40  ;;  %518 = vmatpush.msra.mxu2 %v1606_v47  ;;  %v446_v58 = vand.u32 4294901760, %v445_v48  ;;  %v463_v13 = vsub.f32 %v1663_v31, %v462_v55  ;;  %v1709_v20 = vsub.f32 %v322_v44, %v1689_v57  ;;  %v340_v47 = vld [vmem:[#allocation2 + $0x90] sm:$0xff] }
  0x3d   : > { %372 = vmatpush.msra.mxu0 %v1629_v62  ;;  %568 = vmatpush.msra.mxu3 %v1629_v62  ;;  %v452_v11 = vand.u32 4294901760, %v451_v53  ;;  %v458_v21 = vand.u32 4294901760, %v457_v60  ;;  %v1799_v37 = vand.u32 4294901760, %v342_v33  ;;  %vm986_vm1 = vcmask 7168  }
  0x3e   : > { %429 = vmatpush.msra.mxu1 %v428_v25  ;;  %521 = vmatpush.msra.mxu2 %v1633_v7  ;;  %v474_v15 = vand.u32 4294901760, %v1687_v56  ;;  %v469_v25 = vsub.f32 %v1675_v50, %v468_v63  ;;  %v464_v44 = vand.u32 4294901760, %v463_v13 }
  0x3f   : > { %374 = vmatpush.msra.mxu0 %v1636_v9  ;;  %570 = vmatpush.msra.mxu3 %v1636_v9 }
  0x40   : > { %435 = vmatpush.msra.mxu1 %v434_v41  ;;  %524 = vmatpush.msra.mxu2 %v1644_v12  ;;  %v480_v41 = vand.u32 4294901760, %v1699_v6  ;;  %v475_v48 = vsub.f32 %v1687_v56, %v474_v15  ;;  %v470_v53 = vand.u32 4294901760, %v469_v25 }
  0x41   : > { %376 = vmatpush.msra.mxu0 %v1638_v10  ;;  %572 = vmatpush.msra.mxu3 %v1638_v10 }
  0x42   : > { %441 = vmatpush.msra.mxu1 %v440_v52  ;;  %527 = vmatpush.msra.mxu2 %v1651_v17  ;;  %v486_v52 = vand.u32 4294901760, %v1709_v20  ;;  %v476_v60 = vand.u32 4294901760, %v475_v48 }
  0x43   : > { %378 = vmatpush.msra.mxu0 %v1653_v19  ;;  %574 = vmatpush.msra.mxu3 %v1653_v19 }
  0x44   : > { %447 = vmatpush.msra.mxu1 %v446_v58  ;;  %530 = vmatpush.msra.mxu2 %v1663_v31  ;;  %v481_v58 = vsub.f32 %v1699_v6, %v480_v41 }
  0x45   : > { %380 = vmatpush.msra.mxu0 %v1665_v40  ;;  %576 = vmatpush.msra.mxu3 %v1665_v40 }
  0x46   : > { %453 = vmatpush.msra.mxu1 %v452_v11  ;;  %533 = vmatpush.msra.mxu2 %v1675_v50  ;;  %v487_v11 = vsub.f32 %v1709_v20, %v486_v52  ;;  %v482_v13 = vand.u32 4294901760, %v481_v58 }
  0x47   : > { %382 = vmatpush.msra.mxu0 %v1677_v51  ;;  %578 = vmatpush.msra.mxu3 %v1677_v51 }
  0x48   : > { %459 = vmatpush.msra.mxu1 %v458_v21  ;;  %536 = vmatpush.msra.mxu2 %v1687_v56  ;;  %v488_v21 = vand.u32 4294901760, %v487_v11 }
  0x49   : > { %384 = vmatpush.msra.mxu0 %v1689_v57  ;;  %580 = vmatpush.msra.mxu3 %v1689_v57 }
  0x4a   : > { %465 = vmatpush.msra.mxu1 %v464_v44  ;;  %539 = vmatpush.msra.mxu2 %v1699_v6 }
  0x4b   : > { %591 = vmatpush.msrb.mxu0 %v396_v32 }
  0x4c   : > { %471 = vmatpush.msra.mxu1 %v470_v53  ;;  %542 = vmatpush.msra.mxu2 %v1709_v20 }
  0x4d   : > { %595 = vmatpush.msrb.mxu0 %v402_v36 }
  0x4e   : > { %477 = vmatpush.msra.mxu1 %v476_v60 }
  0x4f   : > { %599 = vmatpush.msrb.mxu0 %v408_v42 }
  0x50   : > { %483 = vmatpush.msra.mxu1 %v482_v13 }
  0x51   : > { %603 = vmatpush.msrb.mxu0 %v414_v43 }
  0x52   : > { %489 = vmatpush.msra.mxu1 %v488_v21 }
  0x53   : > { %607 = vmatpush.msrb.mxu0 %v420_v45  ;;  %v1807_v45 = vsub.f32 %v342_v33, %v1799_v37 }
  0x54   : > { %658 = vmatpush.msrb.mxu1 %v1547_v14  ;;  %v345_v14 = vld [vmem:[#allocation2 + $0xb8] sm:$0x3] }
  0x55   : > { %611 = vmatpush.msrb.mxu0 %v426_v46  ;;  %v1810_v46 = vand.u32 4294901760, %v341_v38 }
  0x56   : > { %660 = vmatpush.msrb.mxu1 %v1550_v18  ;;  %v351_v18 = vsel %vm349_vm8, %v345_v14, 0  ;;  %v1876_v14 = vld [vmem:[%s244_s11] sm:$0xff] }
  0x57   : > { %615 = vmatpush.msrb.mxu0 %v432_v54  ;;  %v1777_v22 = vand.u32 4294901760, %v351_v18  ;;  %v1819_v7 = vsub.f32 %v341_v38, %v1810_v46 }
  0x58   : > { %662 = vmatpush.msrb.mxu1 %v1556_v23  ;;  %v344_v23 = vld [vmem:[#allocation2 + $0xb0] sm:$0xff] }
  0x59   : > { %619 = vmatpush.msrb.mxu0 %v438_v61  ;;  %v1782_v27 = vand.u32 4294901760, %v344_v23  ;;  %703 = vmatpush.msrb.mxu2 %v1777_v22  ;;  %v755_v61 = vand.u32 4294901760, %v1807_v45 }
  0x5a   : > { %664 = vmatpush.msrb.mxu1 %v1558_v24  ;;  %v1780_v24 = vsub.f32 %v351_v18, %v1777_v22 }
  0x5b   : > { %623 = vmatpush.msrb.mxu0 %v444_v16  ;;  %705 = vmatpush.msrb.mxu2 %v1782_v27  ;;  %v756_v12 = vsub.f32 %v1807_v45, %v755_v61 }
  0x5c   : > { %666 = vmatpush.msrb.mxu1 %v1565_v28  ;;  %v343_v28 = vld [vmem:[#allocation2 + $0xa8] sm:$0xff] }
  0x5d   : > { %627 = vmatpush.msrb.mxu0 %v450_v26  ;;  %v1789_v32 = vand.u32 4294901760, %v343_v28  ;;  %v338_v26 = vld [vmem:[#allocation2 + $0x80] sm:$0xff]  ;;  %v757_v31 = vand.u32 4294901760, %v756_v12 }
  0x5e   : > { %668 = vmatpush.msrb.mxu1 %v1567_v29  ;;  %v737_v29 = vand.u32 4294901760, %v1780_v24  ;;  %v1836_v50 = vand.u32 4294901760, %v338_v26 }
  0x5f   : > { %631 = vmatpush.msrb.mxu0 %v456_v49  ;;  %v1797_v36 = vsub.f32 %v343_v28, %v1789_v32  ;;  %707 = vmatpush.msrb.mxu2 %v1789_v32  ;;  %v1383_v28 = vmov 1  }
  0x60   : > { %670 = vmatpush.msrb.mxu1 %v1569_v30  ;;  %v1787_v30 = vsub.f32 %v344_v23, %v1782_v27  ;;  %v738_v34 = vsub.f32 %v1780_v24, %v737_v29  ;;  %v1382_v23 = vmov 0   ;;  %1222 = vset.pattern.permute.xlu2 %v1383_v28 }
  0x61   : > { %635 = vmatpush.msrb.mxu0 %v462_v55  ;;  %v749_v43 = vand.u32 4294901760, %v1797_v36  ;;  %709 = vmatpush.msrb.mxu2 %v1799_v37 }
  0x62   : > { %672 = vmatpush.msrb.mxu1 %v1579_v35  ;;  %v743_v35 = vand.u32 4294901760, %v1787_v30  ;;  %v739_v39 = vand.u32 4294901760, %v738_v34  ;;  %1221 = vset.pattern.permute.xlu1 %v1382_v23 }
  0x63   : > { %639 = vmatpush.msrb.mxu0 %v468_v63  ;;  %711 = vmatpush.msrb.mxu2 %v1810_v46 }
  0x64   : > { %674 = vmatpush.msrb.mxu1 %v1623_v59  ;;  %v744_v42 = vsub.f32 %v1787_v30, %v743_v35  ;;  %740 = vmatpush.msrb.mxu3 %v739_v39  ;;  %v750_v59 = vsub.f32 %v1797_v36, %v749_v43 }
  0x65   : > { %643 = vmatpush.msrb.mxu0 %v474_v15  ;;  %951 = vperm.xlu1 %1221, %v1876_v14  }
  0x66   : > { %676 = vmatpush.msrb.mxu1 %v1629_v62  ;;  %v745_v54 = vand.u32 4294901760, %v744_v42  ;;  %v1816_v62 = vand.u32 4294901760, %v340_v47  ;;  %958 = vperm.xlu2 %1222, %v1876_v14  }
  0x67   : > { %647 = vmatpush.msrb.mxu0 %v480_v41  ;;  %1224 = vset.pattern.permute.xlu0 %v1382_v23 }
  0x68   : > { %678 = vmatpush.msrb.mxu1 %v1636_v9  ;;  %v339_v9 = vld [vmem:[#allocation2 + $0x88] sm:$0xff]  ;;  %746 = vmatpush.msrb.mxu3 %v745_v54  ;;  %v1826_v16 = vsub.f32 %v340_v47, %v1816_v62 }
  0x69   : > { %651 = vmatpush.msrb.mxu0 %v486_v52  ;;  %v1828_v17 = vand.u32 4294901760, %v339_v9  ;;  %713 = vmatpush.msrb.mxu2 %v1816_v62 }
  0x6a   : > { %680 = vmatpush.msrb.mxu1 %v1638_v10  ;;  %v751_v10 = vand.u32 4294901760, %v750_v59  ;;  %v1384_v59 = vmov 2  }
  0x6b   : > { %v1834_v49 = vsub.f32 %v339_v9, %v1828_v17  ;;  %715 = vmatpush.msrb.mxu2 %v1828_v17 }
  0x6c   : > { %682 = vmatpush.msrb.mxu1 %v1653_v19  ;;  %v761_v19 = vand.u32 4294901760, %v1819_v7  ;;  %752 = vmatpush.msrb.mxu3 %v751_v10 }
  0x6d   : > { %v773_v56 = vand.u32 4294901760, %v1834_v49  ;;  %717 = vmatpush.msrb.mxu2 %v1836_v50 }
  0x6e   : > { %684 = vmatpush.msrb.mxu1 %v1665_v40  ;;  %v767_v40 = vand.u32 4294901760, %v1826_v16  ;;  %758 = vmatpush.msrb.mxu3 %v757_v31 }
  0x6f   : > { %v774_v15 = vsub.f32 %v1834_v49, %v773_v56  ;;  %1223 = vset.pattern.permute.xlu2 %v1384_v59 }
  0x70   : > { %686 = vmatpush.msrb.mxu1 %v1677_v51  ;;  %v762_v51 = vsub.f32 %v1819_v7, %v761_v19  ;;  %v768_v55 = vsub.f32 %v1826_v16, %v767_v40  ;;  %965 = vperm.xlu2 %1223, %v1876_v14  }
  0x71   : > { %v775_v25 = vand.u32 4294901760, %v774_v15 }
  0x72   : > { %688 = vmatpush.msrb.mxu1 %v1689_v57  ;;  %v1847_v57 = vsub.f32 %v338_v26, %v1836_v50  ;;  %v763_v63 = vand.u32 4294901760, %v762_v51  ;;  %v769_v6 = vand.u32 4294901760, %v768_v55 }
  0x74   : > { %v779_v20 = vand.u32 4294901760, %v1847_v57  ;;  %764 = vmatpush.msrb.mxu3 %v763_v63 }
  0x76   : > { %v780_v41 = vsub.f32 %v1847_v57, %v779_v20  ;;  %770 = vmatpush.msrb.mxu3 %v769_v6 }
  0x78   : > { %v781_v44 = vand.u32 4294901760, %v780_v41  ;;  %776 = vmatpush.msrb.mxu3 %v775_v25 }
  0x7a   : > { %782 = vmatpush.msrb.mxu3 %v781_v44 }
  0xa4   : > { %v1861_v52 = vpop.xlane.xlu1 %284 }
  0xa5   : > { %v1859_v48 = vpop.xlane.xlu0 %304  ;;  %v314_v53 = vsub.f32 %v1529_v5, %v1861_v52  ;;  %v315_v11 = vsub.f32 %v1523_v3, %v1861_v52 }
  0xa6   : > { %v307_v60 = vsub.f32 %v1523_v3, %v1859_v48 }
  0xa7   : > { %v318_v58 = vmul.f32 1.442695, %v314_v53 }
  0xa8   : > { %v309_v18 = vsel %vm1525_vm5, %v307_v60, -1e+30 }
  0xa9   : > { %1225 = vpow2.f32 %v318_v58  ;;  %v1387_v58 = vmov 0.0  }
  0xad   : > { %v1872_v13 = vpop.xlane.xlu0 %294 }
  0xae   : > { %v311_v21 = vsub.f32 %v1523_v3, %v1872_v13 }
  0xaf   : > { %v1226_v33 = vpop.eup %1225 }
  0xb0   : > { %v313_v34 = vsel %vm1538_vm7, %v311_v21, %v309_v18  ;;  %v385_v39 = vand.u32 4294901760, %v1226_v33 }
  0xb1   : > { %v317_v38 = vsel %vm260_vm3, %v315_v11, %v313_v34 }
  0xb2   : > { %v320_v42 = vmul.f32 1.442695, %v317_v38  ;;  %491 = vmatmul.f32.vlgmr.msra.gmra.mxu1 %v385_v39  ;;  %v386_v4 = vsub.f32 %v1226_v33, %v385_v39 }
  0xb3   : > { %911 = vmatpush.msra.mxu1 %v1777_v22 }
  0xb4   : > { %1227 = vpow2.f32 %v320_v42  ;;  %v387_v47 = vand.u32 4294901760, %v386_v4  ;;  %545 = vmatmul.f32.vlgmr.msra.gmra.mxu2 %v386_v4 }
  0xb5   : > { %913 = vmatpush.msra.mxu1 %v1782_v27  ;;  %798 = vmatpush.msra.mxu2 %v1780_v24 }
  0xb6   : > { %584 = vmatmul.f32.vlgmr.msra.gmra.mxu3 %v387_v47  ;;  %v388_v8 = vsub.f32 %v386_v4, %v387_v47  ;;  %v982_v47 = vstv %s1134_s22 }
  0xb7   : > { %835 = vmatpush.msra.mxu3 %v1777_v22  ;;  %915 = vmatpush.msra.mxu1 %v1789_v32 }
  0xb8   : > { %v389_v54 = vand.u32 4294901760, %v388_v8  ;;  %801 = vmatpush.msra.mxu2 %v1787_v30 }
  0xb9   : > { %837 = vmatpush.msra.mxu3 %v1782_v27  ;;  %917 = vmatpush.msra.mxu1 %v1799_v37 }
  0xba   : > { %v1228_v9 = vpop.eup %1227  ;;  %390 = vmatmul.f32.vlgmr.msra.gmra.mxu0 %v389_v54  ;;  %690 = vmatmul.f32.vlgmr.msrb.gmra.mxu1 %v385_v39 }
  0xbb   : > { %v347_v10 = vsel %vm281_vm0, %v1228_v9, 0  ;;  %839 = vmatpush.msra.mxu3 %v1789_v32  ;;  %868 = vmatpush.msra.mxu0 %v737_v29 }
  0xbc   : > { %v718_v22 = vand.u32 4294901760, %v347_v10  ;;  %919 = vmatpush.msra.mxu1 %v1810_v46  ;;  %804 = vmatpush.msra.mxu2 %v1797_v36 }
  0xbd   : > { %841 = vmatpush.msra.mxu3 %v1799_v37  ;;  %872 = vmatpush.msra.mxu0 %v743_v35 }
  0xbe   : > { %v719_v27 = vsub.f32 %v347_v10, %v718_v22  ;;  %921 = vmatpush.msra.mxu1 %v1816_v62  ;;  %784 = vmatmul.f32.vlgmr.msrb.gmra.mxu3 %v718_v22 }
  0xbf   : > { %843 = vmatpush.msra.mxu3 %v1810_v46  ;;  %876 = vmatpush.msra.mxu0 %v749_v43 }
  0xc0   : > { %v720_v24 = vand.u32 4294901760, %v719_v27  ;;  %923 = vmatpush.msra.mxu1 %v1828_v17  ;;  %807 = vmatpush.msra.mxu2 %v1807_v45  ;;  %v959_v44 = vpop.permute.xlu2 %958 }
  0xc1   : > { %845 = vmatpush.msra.mxu3 %v1816_v62  ;;  %880 = vmatpush.msra.mxu0 %v755_v61  ;;  %vm961_vm10 = vcmp.eq.s32.totalorder %v1517_v2, %v959_v44  ;;  %vm960_vm12 = vcmp.eq.s32.totalorder %v1514_v1, %v959_v44 }
  0xc2   : > { %v721_v29 = vsub.f32 %v719_v27, %v720_v24  ;;  %925 = vmatpush.msra.mxu1 %v1836_v50  ;;  %653 = vmatmul.f32.vlgmr.msrb.gmra.mxu0 %v385_v39 }
  0xc3   : > { %927 = vmatmul.f32.vlgmr.msra.gmra.mxu1 %v718_v22  ;;  %847 = vmatpush.msra.mxu3 %v1828_v17 }
  0xc4   : > { %v722_v30 = vand.u32 4294901760, %v721_v29  ;;  %884 = vmatpush.msra.mxu0 %v761_v19  ;;  %810 = vmatpush.msra.mxu2 %v1819_v7 }
  0xc5   : > { %849 = vmatpush.msra.mxu3 %v1836_v50 }
  0xc6   : > { %723 = vmatmul.f32.vlgmr.msrb.gmra.mxu2 %v722_v30  ;;  %888 = vmatpush.msra.mxu0 %v767_v40 }
  0xc7   : > { %853 = vmatmul.f32.vlgmr.msra.gmra.mxu3 %v720_v24  ;;  %813 = vmatpush.msra.mxu2 %v1826_v16 }
  0xc8   : > { %892 = vmatpush.msra.mxu0 %v773_v56 }
  0xc9   : > { %816 = vmatpush.msra.mxu2 %v1834_v49 }
  0xca   : > { %896 = vmatpush.msra.mxu0 %v779_v20 }
  0xcb   : > { %898 = vmatmul.f32.vlgmr.msra.gmra.mxu0 %v718_v22  ;;  %819 = vmatpush.msra.mxu2 %v1847_v57 }
  0xce   : > { %822 = vmatmul.f32.vlgmr.msra.gmra.mxu2 %v719_v27 }
  0xd7   : > { %v952_v53 = vpop.permute.xlu1 %951 }
  0xd8   : > { %vm954_vm9 = vcmp.eq.s32.totalorder %v1517_v2, %v952_v53  ;;  %vm953_vm11 = vcmp.eq.s32.totalorder %v1514_v1, %v952_v53 }
  0xd9   : > { %v956_v60 = vsel %vm954_vm9, 0.5, %v1387_v58  ;;  %v955_v11 = vsel %vm953_vm11, 0.5, %v1387_v58 }
  0xda   : > { %v962_v21 = vsel %vm960_vm12, 0.25, %v955_v11 }
 0x12f   : > { %v492_v35 = vpop.f32.mrf.mxu1 }
 0x137   : > { %v391_v32 = vpop.f32.mrf.mxu0  ;;  %v546_v37 = vpop.f32.mrf.mxu2 }
 0x138   : > { %v493_v36 = vadd.f32 %v492_v35, %v391_v32  ;;  %v691_v7 = vpop.f32.mrf.mxu1 }
 0x139   : > { %v585_v45 = vpop.f32.mrf.mxu3 }
 0x13a   : > { %v547_v43 = vadd.f32 %v546_v37, %v493_v36 }
 0x13c   : > { %v586_v46 = vadd.f32 %v585_v45, %v547_v43 }
 0x13f   : > { %v654_v61 = vpop.f32.mrf.mxu0 }
 0x140   : > { %v655_v62 = vadd.f32 %v654_v61, %v586_v46  ;;  %v928_v56 = vpop.f32.mrf.mxu1 }
 0x141   : > { %v785_v12 = vpop.f32.mrf.mxu3 }
 0x142   : > { %v692_v17 = vadd.f32 %v691_v7, %v655_v62 }
 0x148   : > { %v899_v51 = vpop.f32.mrf.mxu0 }
 0x149   : > { %v724_v16 = vpop.f32.mrf.mxu2 }
 0x14a   : > { %v725_v19 = vadd.f32 %v724_v16, %v692_v17  ;;  %v854_v49 = vpop.f32.mrf.mxu3 }
 0x14c   : > { %v786_v26 = vadd.f32 %v785_v12, %v725_v19 }
 0x151   : > { %v823_v31 = vpop.f32.mrf.mxu2 }
 0x152   : > { %v824_v40 = vadd.f32 %v823_v31, %v786_v26 }
 0x154   : > { %v855_v50 = vadd.f32 %v854_v49, %v824_v40 }
 0x156   : > { %v900_v55 = vadd.f32 %v899_v51, %v855_v50 }
 0x158   : > { %v929_v57 = vadd.f32 %v928_v56, %v900_v55 }
 0x15a   : > { %1229 = vlog2.f32 %v929_v57 }
 0x160   : > { %v1230_v63 = vpop.eup %1229 }
 0x161   : > { %v932_v6 = vmul.f32 0.6931472, %v1230_v63 }
 0x163   : > { %v943_v15 = vadd.f32 %v932_v6, %v1859_v48  ;;  %v936_v20 = vadd.f32 %v932_v6, %v1872_v13  ;;  %v966_v48 = vpop.permute.xlu2 %965  ;;  %v963_v13 = vsel %vm961_vm10, 0.25, %v956_v60  ;;  %v933_v38 = vadd.f32 %v932_v6, %v1861_v52 }
 0x164   : > { %vm968_vm13 = vcmp.eq.s32.totalorder %v1517_v2, %v966_v48  ;;  %vm967_vm14 = vcmp.eq.s32.totalorder %v1514_v1, %v966_v48  ;;  %v981_v2 = vshrl.u32 %v254_v0, 7 }
 0x165   : > { %v944_v25 = vmul.f32 0.25, %v943_v15  ;;  %v937_v41 = vmul.f32 0.25, %v936_v20  ;;  %v970_v14 = vsel %vm968_vm13, 0.25, %v963_v13  ;;  %v969_v18 = vsel %vm967_vm14, 0.25, %v962_v21 }
 0x166   : > { %v972_v23 = vmul.f32 %v970_v14, %v1523_v3  ;;  %v971_v28 = vmul.f32 %v969_v18, %v1529_v5  ;;  %v934_v4 = vmul.f32 0.5, %v933_v38  ;;  %v983_v8 = vadd.s32 %v982_v47, %v981_v2 }
 0x167   : > { %946 = vrot.lane.b32.xlu2 %v944_v25, %s1385_s20  ;;  %939 = vrot.lane.b32.xlu0 %v937_v41, %s1386_s21 }
 0x168   : > { %v973_v33 = vsel %vm281_vm0, %v972_v23, 0.0  ;;  %vm984_vm15 = vcmp.lt.s32.totalorder %v983_v8, 8 }
 0x169   : > { %v974_v34 = vadd.f32 %v973_v33, %v971_v28 }
 0x190   : > { %975 = vadd.xlane.f32.xlu2 %v974_v34 }
 0x1c1   : > { %v947_v39 = vpop.permute.xlu2 %946 }
 0x1d9   : > { %v940_v42 = vpop.permute.xlu0 %939 }
 0x1da   : > { %v942_v1 = vadd.f32 %v940_v42, %v934_v4 }
 0x1dc   : > { %v949_v54 = vadd.f32 %v947_v39, %v942_v1 }
 0x203   : > { %v976_v3 = vpop.xlane.xlu2 %975 }
 0x204   : > { %v977_v5 = vsub.f32 %v949_v54, %v976_v3 }
 0x206   : > { %v985_v59 = vsel %vm984_vm15, %v977_v5, 0.0 }
 0x207   : > { %v987_v9 = vsel %vm986_vm1, %v985_v59, 0.0 }
 0x208   : > { %v988_v10 = vrot.slane %v987_v9, 4 }
 0x20a   : > { %v989_v52 = vadd.f32 %v988_v10, %v987_v9 }
 0x20c   : > { %v990_v22 = vrot.slane %v989_v52, 2 }
 0x20e   : > { %v991_v27 = vadd.f32 %v990_v22, %v989_v52 }
 0x210   : > { %v992_v24 = vrot.slane %v991_v27, 1 }
 0x212   : > { %v993_v29 = vadd.f32 %v992_v24, %v991_v27 }
 0x214   : > { %997 = vperm.xlu1 %1221, %v993_v29  }
 0x286   : > { %v998_v0 = vpop.permute.xlu1 %997 }
 0x287   : > { %1001 = vst [vmem:[%s238_s26] sm:$0xff] %v998_v0 }
 0x288   : > { %1318 = shalt.err (!%p1315_p0)
}
 0x289   : > { %1146 = dma.vmem_to_hbm [thread:$0]  (%p1479_p4), %s1016_s27, 128, %s1018_s30, %s1003_s4  }
 0x28a PF: > { %s1029_s28 = sand.u32 1, %s1357_s12   ;;  %p1157_p2 = pnand %p1125_p6, %p1487_p7 }
 0x28b   : > { %s1030_s21 = scalar_lea.sflag [#allocation4], %s1029_s28 }
 0x28c   : > { %p1158_p5 = pneg %p1157_p2 }
 0x28e   : > { %1352 = dma.done.wait (%p1158_p5), %s1030_s21, 128  }
 0x28f   : > { %1354 = vsyncadd (%p1158_p5), %s1030_s21, 4294967168  ;;  %s20_s17 = sadd.s32 1, %s1377_s17   ;;  %s1994_s12 = smov %s1361_s13 }
 0x290   : > { %p17_p8 = scmp.ge.s32.totalorder %s20_s17, 4   ;;  %s1995_s13 = smov %s1365_s14 }
 0x291   : > { %s1996_s14 = smov %s1485_s8  ;;  %s1997_s15 = smov %s1373_s16 }
 0x292   : > { %s1998_s16 = smov %s2000_s29  ;;  %19 = sbr.rel (!%p17_p8) target bundleno = 7 (0x7), region = 89 }
 0x297   :  { %1036 = vsyncpa [#allocation3], 1 }
 0x298   :  { %1038 = vsyncpa [#allocation3 + $0x1], 1 }
 0x299   :  { %1039 = vsyncpa [#allocation6], 1 }
 0x29a   :  { %1041 = vsyncpa [#allocation6 + $0x1], 1 }
 0x29b   :  { %1042 = vsyncpa [#allocation4], 1 }
 0x29c   :  { %1044 = vsyncpa [#allocation4 + $0x1], 1 }

</bundles_post_ra>
